<compile_context>
chip_gen: v6e
topology: v6e:2x2x1
jax: 0.10.0
libtpu: 0.0.40
codegen_flags: <defaults>
</compile_context>

<pallas_src>
import math

import jax
import jax.numpy as jnp
from jax.experimental import pallas as pl
from jax.experimental.pallas import tpu as pltpu


def _round_up(x, m):
    return ((x + m - 1) // m) * m


def _cdiv(a, b):
    return -(-a // b)


def _gru_fused_kernel(x_ref, h_ref, wx_ref, wh_ref, bx_ref, bh_ref, out_ref):
    """Fused GRUCell step on a lane-dense (TRp, P*C) row tile.

    Each packed row holds P original rows side-by-side along the 128-lane
    axis.  wx/wh are gate-major block-diagonal (P*C, 3*P*C) weights, so the
    matmul output columns are [r | z | n] gate blocks, each P*C lanes wide;
    every slice, transcendental and store below is a full-vreg, 128-lane op.
    """
    PC = x_ref.shape[-1]
    x = x_ref[...]
    h = h_ref[...]

    # Two single-pass MXU matmuls with f32 accumulation (no [x|h] lane-concat,
    # no zero weight blocks, no multi-pass HIGHEST precision).
    gx = jnp.dot(x, wx_ref[...], preferred_element_type=jnp.float32) + bx_ref[...]
    gh = jnp.dot(h, wh_ref[...], preferred_element_type=jnp.float32) + bh_ref[...]

    # One wide sigmoid over the contiguous [r | z] block (halves EUP pushes).
    rz = jax.nn.sigmoid(gx[:, :2 * PC] + gh[:, :2 * PC])
    r = rz[:, :PC]
    z = rz[:, PC:]
    # n = tanh(i_n + b_in + r * (h_n + b_hn)); b_in/b_hn already folded into gx/gh.
    n = jnp.tanh(gx[:, 2 * PC:] + r * gh[:, 2 * PC:])

    hf = h.astype(jnp.float32)
    out_ref[...] = ((1.0 - z) * n + z * hf).astype(out_ref.dtype)


def _pick_packed_tile(rp, *, pack, row_tile):
    """Packed-row tile: multiple of 8, large enough to amortize the ~0.35us
    per-step overhead, capped so huge problems keep ~8 grid steps for v7x."""
    max_tp = max(8, _round_up(row_tile // pack, 8))     # VMEM cap
    min_tp = max(8, _round_up(8192 // pack, 8))         # per-step DMA >> overhead
    tp = _round_up(_cdiv(rp, 8), 8)                     # aim for ~8 grid steps
    tp = min(max_tp, max(min_tp, tp))
    tp = min(tp, _round_up(rp, 8))                      # don't exceed the problem
    return tp


def gru_cell_pallas(x, h, params, *, row_tile=16384):
    """Batched PyTorch-GRUCell step: x=(R,C) inputs, h=(R,C) hiddens -> (R,C).

    Single pallas_call over a lane-dense (R/P, P*C) view of the row slab;
    packed block-diagonal weights stay resident in VMEM across all row tiles.
    `row_tile` = max original rows per grid step.
    """
    R, C = x.shape
    P = int(params["pack"])
    PC = P * C
    wx, wh = params["wx"], params["wh"]          # (PC, 3*PC), streaming dtype
    bx, bh = params["bx"], params["bh"]          # (1, 3*PC), f32
    dtype = wx.dtype

    x = x.astype(dtype)
    h = h.astype(dtype)

    # Fold P consecutive rows into the lane axis (free row-major reshape).
    # Only a tiny (<= 8*P - 1 = 31 row) alignment pad when R % (8*P) != 0, so
    # packed rows land on sublane multiples of 8; no tile-sized padding.
    R1 = _round_up(R, 8 * P)
    if R1 != R:
        x = jnp.pad(x, ((0, R1 - R), (0, 0)))
        h = jnp.pad(h, ((0, R1 - R), (0, 0)))
    Rp = R1 // P
    xp = x.reshape(Rp, PC)
    hp = h.reshape(Rp, PC)

    TRp = _pick_packed_tile(Rp, pack=P, row_tile=row_tile)
    grid = (_cdiv(Rp, TRp),)      # partial last block handled by Pallas masking

    itemsize = jnp.dtype(dtype).itemsize
    cost = pl.CostEstimate(
        flops=2 * 2 * Rp * PC * (3 * PC) + 12 * Rp * PC,
        transcendentals=3 * Rp * PC,
        bytes_accessed=3 * Rp * PC * itemsize
        + (wx.size + wh.size) * itemsize
        + (bx.size + bh.size) * 4,
    )

    outp = pl.pallas_call(
        _gru_fused_kernel,
        out_shape=jax.ShapeDtypeStruct((Rp, PC), dtype),
        grid=grid,
        in_specs=[
            pl.BlockSpec((TRp, PC), lambda i: (i, 0)),          # x rows (lane dense)
            pl.BlockSpec((TRp, PC), lambda i: (i, 0)),          # h rows (lane dense)
            pl.BlockSpec((PC, 3 * PC), lambda i: (0, 0)),       # Wx (resident)
            pl.BlockSpec((PC, 3 * PC), lambda i: (0, 0)),       # Wh (resident)
            pl.BlockSpec((1, 3 * PC), lambda i: (0, 0)),        # bx (resident)
            pl.BlockSpec((1, 3 * PC), lambda i: (0, 0)),        # bh (resident)
        ],
        out_specs=pl.BlockSpec((TRp, PC), lambda i: (i, 0)),    # 128-lane dense stores
        compiler_params=pltpu.CompilerParams(
            dimension_semantics=("parallel",),                   # v7x: shard rows on 2 TCs
            vmem_limit_bytes=32 * 1024 * 1024),
        cost_estimate=cost,
    )(xp, hp, wx, wh, bx, bh)

    out = outp.reshape(R1, C)
    return out[:R] if R1 != R else out


def init_gru_params(key, n_channels, *, pack=4, dtype=jnp.bfloat16):
    """Deterministic init matching torch.nn.GRUCell.reset_parameters
    (every weight/bias ~ U(-1/sqrt(hidden), 1/sqrt(hidden))), plus the packed
    gate-major block-diagonal weights used by the lane-dense kernel.

    pack=4 gives 128-lane density (and matches v5e's 128-wide MXU contraction);
    pack=8 would fill the 256-wide MXU contraction dim on v6e/v7x.
    """
    C = n_channels
    bound = 1.0 / math.sqrt(C)
    keys = jax.random.split(key, 4)
    w_ih = jax.random.uniform(keys[0], (3 * C, C), jnp.float32, -bound, bound)
    w_hh = jax.random.uniform(keys[1], (3 * C, C), jnp.float32, -bound, bound)
    b_ih = jax.random.uniform(keys[2], (3 * C,), jnp.float32, -bound, bound)
    b_hh = jax.random.uniform(keys[3], (3 * C,), jnp.float32, -bound, bound)

    eye = jnp.eye(pack, dtype=jnp.float32)

    def pack_w(w):
        # torch layout (3C, C), gate g rows [gC:(g+1)C]; x @ w[g].T = gate g proj.
        # -> (pack*C, 3*pack*C), gate-major, block-diag replicated per lane slot.
        return jnp.concatenate(
            [jnp.kron(eye, w[g * C:(g + 1) * C].T) for g in range(3)], axis=1)

    def pack_b(b):
        return jnp.concatenate(
            [jnp.tile(b[g * C:(g + 1) * C], pack) for g in range(3)])[None, :]

    return {
        "pack": pack,
        "wx": pack_w(w_ih).astype(dtype),
        "wh": pack_w(w_hh).astype(dtype),
        "bx": pack_b(b_ih),          # f32, added to the f32 MXU accumulator
        "bh": pack_b(b_hh),          # f32 (b_hn stays inside r*(h@Whn+b_hn))
        # raw torch-layout params for the pure-JAX reference
        "w_ih": w_ih, "w_hh": w_hh, "b_ih": b_ih, "b_hh": b_hh,
    }


def semantic_update_gru(current_in_dict, past_in_dict, params):
    """Forward pass of SemanticUpdateGRU on nested {node_type: {r_type: emb}} dicts.

    All embedding matrices are stacked into one (R, C) slab so the GRU cell
    runs as a single fused lane-dense Pallas call, then split back into dicts.
    """
    if past_in_dict is None:
        return current_in_dict

    # TODO(synk): the concatenate/split below are extra HBM passes; allocate the
    # per-(node_type, r_type) embeddings contiguously upstream to remove them.
    keys, xs, hs = [], [], []
    for node_type, current_in in current_in_dict.items():
        for r_type, current_emb in current_in.items():
            keys.append((node_type, r_type))
            xs.append(current_emb)
            hs.append(past_in_dict[node_type][r_type])

    X = jnp.concatenate(xs, axis=0)
    H = jnp.concatenate(hs, axis=0)
    out = gru_cell_pallas(X, H, params)

    out_dict = {}
    off = 0
    for (node_type, r_type), x in zip(keys, xs):
        n = x.shape[0]
        out_dict.setdefault(node_type, {})[r_type] = out[off:off + n]
        off += n
    return out_dict


def _gru_cell_ref(x, h, params):
    """Pure-JAX PyTorch-GRUCell reference, fed the same dtype-rounded values
    as the kernel (so the check isolates kernel error from bf16 input cast)."""
    dtype = params["wx"].dtype
    C = x.shape[-1]
    xf = x.astype(dtype).astype(jnp.float32)
    hf = h.astype(dtype).astype(jnp.float32)
    w_ih = params["w_ih"].astype(dtype).astype(jnp.float32)
    w_hh = params["w_hh"].astype(dtype).astype(jnp.float32)
    gi = xf @ w_ih.T + params["b_ih"]
    gh = hf @ w_hh.T + params["b_hh"]
    i_r, i_z, i_n = gi[:, :C], gi[:, C:2 * C], gi[:, 2 * C:]
    h_r, h_z, h_n = gh[:, :C], gh[:, C:2 * C], gh[:, 2 * C:]
    r = jax.nn.sigmoid(i_r + h_r)
    z = jax.nn.sigmoid(i_z + h_z)
    n = jnp.tanh(i_n + r * h_n)
    return (1.0 - z) * n + z * hf


if __name__ == "__main__":
    n_channels = 32   # GRUCell(n_channels, n_channels)
    n_nodes = 16      # rows per (node_type, r_type) embedding matrix

    key = jax.random.PRNGKey(0)
    k_param, k_data = jax.random.split(key)
    params = init_gru_params(k_param, n_channels, pack=4, dtype=jnp.bfloat16)

    node_types = ["user", "item"]
    r_types = ["rel_a", "rel_b"]
    data_keys = jax.random.split(k_data, 2 * len(node_types) * len(r_types))

    current_in_dict, past_in_dict = {}, {}
    ki = 0
    for nt in node_types:
        current_in_dict[nt], past_in_dict[nt] = {}, {}
        for rt in r_types:
            current_in_dict[nt][rt] = jax.random.normal(
                data_keys[ki], (n_nodes, n_channels), jnp.float32); ki += 1
            past_in_dict[nt][rt] = jax.random.normal(
                data_keys[ki], (n_nodes, n_channels), jnp.float32); ki += 1

    out_dict = semantic_update_gru(current_in_dict, past_in_dict, params)
    jax.block_until_ready(out_dict)

    # verify against pure-JAX GRUCell reference (bf16 streaming -> loose tol)
    ok = True
    for nt in node_types:
        for rt in r_types:
            ref = _gru_cell_ref(current_in_dict[nt][rt], past_in_dict[nt][rt], params)
            got = out_dict[nt][rt].astype(jnp.float32)
            if not jnp.allclose(got, ref, atol=3e-2, rtol=3e-2):
                ok = False

    # past_in_dict=None path returns the input unchanged
    passthrough = semantic_update_gru(current_in_dict, None, params)
    ok = ok and (passthrough is current_in_dict)

    print("KERNEL_OK" if ok else "MISMATCH")
</pallas_src>

<mosaic_0001>
module attributes {stable_mosaic.version = 11 : i64} {
  func.func @_gru_fused_kernel(%arg0: i32, %arg1: memref<16x128xbf16, #tpu.memory_space<vmem>>, %arg2: memref<16x128xbf16, #tpu.memory_space<vmem>>, %arg3: memref<128x384xbf16, #tpu.memory_space<vmem>>, %arg4: memref<128x384xbf16, #tpu.memory_space<vmem>>, %arg5: memref<1x384xf32, #tpu.memory_space<vmem>>, %arg6: memref<1x384xf32, #tpu.memory_space<vmem>>, %arg7: memref<16x128xbf16, #tpu.memory_space<vmem>>) attributes {dimension_semantics = [#tpu.dimension_semantics<parallel>], iteration_bounds = array<i64: 1>, scalar_prefetch = 0 : i64, scratch_operands = 0 : i64, tpu.core_type = #tpu.core_type<tc>, window_params = [{transform_indices = @transform_0, window_bounds = array<i64: 16, 128>}, {transform_indices = @transform_1, window_bounds = array<i64: 16, 128>}, {pipeline_mode = #tpu.pipeline_mode<synchronous>, transform_indices = @transform_2, window_bounds = array<i64: 128, 384>}, {pipeline_mode = #tpu.pipeline_mode<synchronous>, transform_indices = @transform_3, window_bounds = array<i64: 128, 384>}, {pipeline_mode = #tpu.pipeline_mode<synchronous>, transform_indices = @transform_4, window_bounds = array<i64: 1, 384>}, {pipeline_mode = #tpu.pipeline_mode<synchronous>, transform_indices = @transform_5, window_bounds = array<i64: 1, 384>}, {transform_indices = @transform_6, window_bounds = array<i64: 16, 128>}]} {
    %c0 = arith.constant 0 : index
    %c0_0 = arith.constant 0 : index
    %0 = vector.load %arg1[%c0, %c0_0] : memref<16x128xbf16, #tpu.memory_space<vmem>>, vector<16x128xbf16>
    %c0_1 = arith.constant 0 : index
    %c0_2 = arith.constant 0 : index
    %1 = vector.load %arg2[%c0_1, %c0_2] : memref<16x128xbf16, #tpu.memory_space<vmem>>, vector<16x128xbf16>
    %c0_3 = arith.constant 0 : index
    %c0_4 = arith.constant 0 : index
    %2 = vector.load %arg3[%c0_3, %c0_4] : memref<128x384xbf16, #tpu.memory_space<vmem>>, vector<128x384xbf16>
    %cst = arith.constant dense<0.000000e+00> : vector<16x384xf32>
    %3 = tpu.matmul %0, %2, %cst {dimension_numbers = #tpu.dot_dimension_numbers<[1], [0], [0], [1], [0, 0, 1, 1], [], []>} : vector<16x128xbf16>, vector<128x384xbf16>, vector<16x384xf32> -> vector<16x384xf32>
    %c0_5 = arith.constant 0 : index
    %c0_6 = arith.constant 0 : index
    %4 = vector.load %arg5[%c0_5, %c0_6] : memref<1x384xf32, #tpu.memory_space<vmem>>, vector<1x384xf32>
    %5 = vector.broadcast %4 : vector<1x384xf32> to vector<16x384xf32>
    %6 = arith.addf %3, %5 : vector<16x384xf32>
    %c0_7 = arith.constant 0 : index
    %c0_8 = arith.constant 0 : index
    %7 = vector.load %arg4[%c0_7, %c0_8] : memref<128x384xbf16, #tpu.memory_space<vmem>>, vector<128x384xbf16>
    %cst_9 = arith.constant dense<0.000000e+00> : vector<16x384xf32>
    %8 = tpu.matmul %1, %7, %cst_9 {dimension_numbers = #tpu.dot_dimension_numbers<[1], [0], [0], [1], [0, 0, 1, 1], [], []>} : vector<16x128xbf16>, vector<128x384xbf16>, vector<16x384xf32> -> vector<16x384xf32>
    %c0_10 = arith.constant 0 : index
    %c0_11 = arith.constant 0 : index
    %9 = vector.load %arg6[%c0_10, %c0_11] : memref<1x384xf32, #tpu.memory_space<vmem>>, vector<1x384xf32>
    %10 = vector.broadcast %9 : vector<1x384xf32> to vector<16x384xf32>
    %11 = arith.addf %8, %10 : vector<16x384xf32>
    %12 = vector.extract_strided_slice %6 {offsets = [0, 0], sizes = [16, 256], strides = [1, 1]} : vector<16x384xf32> to vector<16x256xf32>
    %13 = vector.extract_strided_slice %11 {offsets = [0, 0], sizes = [16, 256], strides = [1, 1]} : vector<16x384xf32> to vector<16x256xf32>
    %14 = arith.addf %12, %13 : vector<16x256xf32>
    %15 = arith.negf %14 : vector<16x256xf32>
    %16 = math.exp %15 : vector<16x256xf32>
    %cst_12 = arith.constant 1.000000e+00 : f32
    %17 = vector.broadcast %cst_12 : f32 to vector<16x256xf32>
    %18 = arith.addf %17, %16 : vector<16x256xf32>
    %19 = arith.divf %17, %18 : vector<16x256xf32>
    %20 = vector.extract_strided_slice %19 {offsets = [0, 0], sizes = [16, 128], strides = [1, 1]} : vector<16x256xf32> to vector<16x128xf32>
    %21 = vector.extract_strided_slice %19 {offsets = [0, 128], sizes = [16, 128], strides = [1, 1]} : vector<16x256xf32> to vector<16x128xf32>
    %22 = vector.extract_strided_slice %6 {offsets = [0, 256], sizes = [16, 128], strides = [1, 1]} : vector<16x384xf32> to vector<16x128xf32>
    %23 = vector.extract_strided_slice %11 {offsets = [0, 256], sizes = [16, 128], strides = [1, 1]} : vector<16x384xf32> to vector<16x128xf32>
    %24 = arith.mulf %20, %23 : vector<16x128xf32>
    %25 = arith.addf %22, %24 : vector<16x128xf32>
    %26 = math.tanh %25 : vector<16x128xf32>
    %27 = arith.extf %1 : vector<16x128xbf16> to vector<16x128xf32>
    %cst_13 = arith.constant 1.000000e+00 : f32
    %28 = vector.broadcast %cst_13 : f32 to vector<16x128xf32>
    %29 = arith.subf %28, %21 : vector<16x128xf32>
    %30 = arith.mulf %29, %26 : vector<16x128xf32>
    %31 = arith.mulf %21, %27 : vector<16x128xf32>
    %32 = arith.addf %30, %31 : vector<16x128xf32>
    %33 = arith.truncf %32 : vector<16x128xf32> to vector<16x128xbf16>
    %c0_14 = arith.constant 0 : index
    %c0_15 = arith.constant 0 : index
    %34 = vector.load %arg7[%c0_14, %c0_15] : memref<16x128xbf16, #tpu.memory_space<vmem>>, vector<16x128xbf16>
    tpu.vector_store %arg7[%c0_14, %c0_15], %33 {strides = array<i32>} : memref<16x128xbf16, #tpu.memory_space<vmem>>, vector<16x128xbf16>,
    return
  }
  func.func @transform_0(%arg0: i32) -> (i32, i32) {
    %c0_i32 = arith.constant 0 : i32
    %c0_i32_0 = arith.constant 0 : i32
    return %arg0, %c0_i32 : i32, i32
  }
  func.func @transform_1(%arg0: i32) -> (i32, i32) {
    %c0_i32 = arith.constant 0 : i32
    %c0_i32_0 = arith.constant 0 : i32
    return %arg0, %c0_i32 : i32, i32
  }
  func.func @transform_2(%arg0: i32) -> (i32, i32) {
    %c0_i32 = arith.constant 0 : i32
    %c0_i32_0 = arith.constant 0 : i32
    %c0_i32_1 = arith.constant 0 : i32
    return %c0_i32, %c0_i32_0 : i32, i32
  }
  func.func @transform_3(%arg0: i32) -> (i32, i32) {
    %c0_i32 = arith.constant 0 : i32
    %c0_i32_0 = arith.constant 0 : i32
    %c0_i32_1 = arith.constant 0 : i32
    return %c0_i32, %c0_i32_0 : i32, i32
  }
  func.func @transform_4(%arg0: i32) -> (i32, i32) {
    %c0_i32 = arith.constant 0 : i32
    %c0_i32_0 = arith.constant 0 : i32
    %c0_i32_1 = arith.constant 0 : i32
    return %c0_i32, %c0_i32_0 : i32, i32
  }
  func.func @transform_5(%arg0: i32) -> (i32, i32) {
    %c0_i32 = arith.constant 0 : i32
    %c0_i32_0 = arith.constant 0 : i32
    %c0_i32_1 = arith.constant 0 : i32
    return %c0_i32, %c0_i32_0 : i32, i32
  }
  func.func @transform_6(%arg0: i32) -> (i32, i32) {
    %c0_i32 = arith.constant 0 : i32
    %c0_i32_0 = arith.constant 0 : i32
    return %arg0, %c0_i32 : i32, i32
  }
}

</mosaic_0001>

<bundles_post_ra>
// kernel: tpu_custom_call.1
= control target key start
LH: loop header
LB: loop body
LE: loop exit
PB: predicated region body
PF: predicated region fallthrough
CT: control target
= control target key end

     0   :  { %11 = vsyncpa [#allocation3], 0  ;;  %s1125_s0 = inlined_call_operand.hbm [shape: bf16[16,128], index: 0, kind: input, shape index: {}]   ;;  %s1126_s1 = inlined_call_operand.hbm [shape: bf16[16,128], index: 1, kind: input, shape index: {}]   ;;  %s1127_s2 = inlined_call_operand.hbm [shape: bf16[128,384], index: 2, kind: input, shape index: {}]   ;;  %s1128_s3 = inlined_call_operand.hbm [shape: bf16[128,384], index: 3, kind: input, shape index: {}]   ;;  %s1129_s4 = inlined_call_operand.vmem [shape: f32[1,384], index: 4, kind: input, shape index: {}]   ;;  %s1130_s5 = inlined_call_operand.vmem [shape: f32[1,384], index: 5, kind: input, shape index: {}]   ;;  %s1131_s6 = inlined_call_operand.hbm [shape: bf16[16,128], index: 6, kind: output, shape index: {}]  }
   0x1   :  { %12 = vsyncpa [#allocation6], 0 }
   0x2   :  { %13 = vsyncpa [#allocation9], 0 }
   0x3   :  { %14 = vsyncpa [#allocation4], 0  ;;  %s1019_s21 = smov [#allocation5]   ;;  %s1020_s23 = smov [#allocation2]  }
   0x4   :  { %s32_s22 = sshll.u32 %s1019_s21, 4  ;;  %s20_s24 = sshll.u32 %s1020_s23, 4  ;;  %s33_s22 = int_to_ptr.vmem [resolvable:$true] %s32_s22  ;;  %s21_s24 = int_to_ptr.vmem [resolvable:$true] %s20_s24 }
   0x5   :  { %s919_s25 = scalar_lea.vmem %s33_s22, 128  ;;  %p924_p1 = scmp.lt.s32.totalorder %s33_s22, %s33_s22 }
   0x6   :  { %p920_p0 = scmp.ne.s32.totalorder %s33_s22, %s919_s25  ;;  %p925_p2 = scmp.lt.s32.totalorder %s919_s25, %s919_s25 }
   0x8   :  { %p926_p3 = por %p925_p2, %p924_p1 }
   0xa   :  { %p927_p4 = pnand %p926_p3, %p920_p0 }
   0xc   :  { %930 = shalt.err (!%p927_p4)
}
   0xd   :  { %s1021_s26 = smov 64   ;;  %s1022_s27 = smov 4  }
   0xe   :  { %38 = dma.hbm_to_vmem [thread:$0]  %s1126_s1, 128, %s33_s22, [#allocation6], %s1021_s26, %s1021_s26, %s1022_s27  }
   0xf   :  { %s939_s30 = scalar_lea.vmem %s21_s24, 128  ;;  %p944_p6 = scmp.lt.s32.totalorder %s21_s24, %s21_s24 }
  0x10   :  { %p940_p5 = scmp.ne.s32.totalorder %s21_s24, %s939_s30  ;;  %p945_p7 = scmp.lt.s32.totalorder %s939_s30, %s939_s30 }
  0x12   :  { %p946_p8 = por %p945_p7, %p944_p6 }
  0x14   :  { %p947_p9 = pnand %p946_p8, %p940_p5 }
  0x16   :  { %950 = shalt.err (!%p947_p9)
}
  0x17   :  { %26 = dma.hbm_to_vmem [thread:$0]  %s1125_s0, 128, %s21_s24, [#allocation3], %s1021_s26, %s1021_s26, %s1022_s27  }
  0x18   :  { %s1023_s9 = smov [#allocation7]  }
  0x19   :  { %s44_s10 = sshll.u32 %s1023_s9, 4  ;;  %s45_s10 = int_to_ptr.vmem [resolvable:$true] %s44_s10 }
  0x1a   :  { %s959_s11 = scalar_lea.vmem %s45_s10, 3072  ;;  %p964_p11 = scmp.lt.s32.totalorder %s45_s10, %s45_s10 }
  0x1b   :  { %p960_p10 = scmp.ne.s32.totalorder %s45_s10, %s959_s11  ;;  %p965_p12 = scmp.lt.s32.totalorder %s959_s11, %s959_s11 }
  0x1d   :  { %p966_p13 = por %p965_p12, %p964_p11 }
  0x1f   :  { %p967_p0 = pnand %p966_p13, %p960_p10 }
  0x21   :  { %970 = shalt.err (!%p967_p0)
}
  0x22   :  { %s1024_s1 = smov 192   ;;  %s1025_s12 = smov 12  }
  0x23   :  { %50 = dma.hbm_to_vmem [thread:$0]  %s1127_s2, 3072, %s45_s10, [#allocation6], %s1024_s1, %s1024_s1, %s1025_s12  }
  0x24   :  { %s1026_s15 = smov [#allocation8]  }
  0x25   :  { %s56_s16 = sshll.u32 %s1026_s15, 4  ;;  %s57_s16 = int_to_ptr.vmem [resolvable:$true] %s56_s16 }
  0x26   :  { %s979_s0 = scalar_lea.vmem %s57_s16, 3072  ;;  %p984_p2 = scmp.lt.s32.totalorder %s57_s16, %s57_s16 }
  0x27   :  { %p980_p1 = scmp.ne.s32.totalorder %s57_s16, %s979_s0  ;;  %p985_p3 = scmp.lt.s32.totalorder %s979_s0, %s979_s0 }
  0x29   :  { %p986_p4 = por %p985_p3, %p984_p2 }
  0x2b   :  { %p987_p5 = pnand %p986_p4, %p980_p1 }
  0x2d   :  { %990 = shalt.err (!%p987_p5)
}
  0x2e   :  { %62 = dma.hbm_to_vmem [thread:$0]  %s1128_s3, 3072, %s57_s16, [#allocation9], %s1024_s1, %s1024_s1, %s1025_s12  }
  0x2f   :  { %1011 = dma.done.wait [#allocation3], 128  }
  0x30   :  { %1012 = vsyncadd [#allocation3], 4294967168 }
  0x31   :  { %1013 = dma.done.wait [#allocation6], 3200  }
  0x32   :  { %1014 = vsyncadd [#allocation6], 4294964096 }
  0x33   :  { %1015 = dma.done.wait [#allocation9], 3072  }
  0x34   :  { %1016 = vsyncadd [#allocation9], 4294964224  ;;  %v1027_v0 = vmov 0.0   ;;  %v1028_v1 = vmov 0   ;;  %vm1029_vm0 = vmmov 0   ;;  %v849_v25 = vld [vmem:[#allocation2] sm:$0xff]   ;;  %v118_v56 = vlaneseq }
  0x35   :  { %772 = vmatprep.subr.bf16.mxu1 %v1027_v0  ;;  %299 = vmatprep.mubr.bf16.mxu0 %v1028_v1  ;;  %v824_v2 = vld [vmem:[#allocation7 + $0xac] ss:$12 sps:$4 sm:$0xff]   ;;  %v826_v3 = vld [vmem:[#allocation7 + $0xa8] ss:$12 sps:$4 sm:$0xff]   ;;  %v829_v5 = vld [vmem:[#allocation7 + $0x90] ss:$12 sps:$4 sm:$0xff]  }
  0x36   :  { %788 = vmatprep.mubr.msk.bf16.mxu1 %vm1029_vm0, %v1027_v0  ;;  %267 = vmatprep.subr.bf16.mxu0 %v824_v2  ;;  %v827_v4 = vld [vmem:[#allocation7 + $0x94] ss:$12 sps:$4 sm:$0xff]   ;;  %v830_v6 = vld [vmem:[#allocation7 + $0x7c] ss:$12 sps:$4 sm:$0xff]   ;;  %v832_v7 = vld [vmem:[#allocation7 + $0x78] ss:$12 sps:$4 sm:$0xff]  }
  0x37   :  { %268 = vmatpush1.bf16.msra.mxu0 %v826_v3  ;;  %v833_v8 = vld [vmem:[#allocation7 + $0x64] ss:$12 sps:$4 sm:$0xff]   ;;  %v835_v9 = vld [vmem:[#allocation7 + $0x60] ss:$12 sps:$4 sm:$0xff]   ;;  %v838_v13 = vld [vmem:[#allocation7 + $0x48] ss:$12 sps:$4 sm:$0xff]  }
  0x38   :  { %269 = vmatprep.subr.bf16.mxu0 %v827_v4  ;;  %v848_v10 = vld [vmem:[#allocation7 + $0xb0] ss:$12 sps:$4 sm:$0xff]   ;;  %v836_v11 = vld [vmem:[#allocation7 + $0x4c] ss:$12 sps:$4 sm:$0xff]   ;;  %v839_v14 = vld [vmem:[#allocation7 + $0x34] ss:$12 sps:$4 sm:$0xff]  }
  0x39   :  { %773 = vmatpush3.bf16.msra.mxu1 %v848_v10  ;;  %v853_v12 = vld [vmem:[#allocation7 + $0x98] ss:$12 sps:$4 sm:$0xff]   ;;  %v857_v15 = vld [vmem:[#allocation7 + $0x80] ss:$12 sps:$4 sm:$0xff]   ;;  %v841_v16 = vld [vmem:[#allocation7 + $0x30] ss:$12 sps:$4 sm:$0xff]  }
  0x3a   :  { %774 = vmatprep.subr.bf16.mxu1 %v1027_v0  ;;  %v842_v17 = vld [vmem:[#allocation7 + $0x1c] ss:$12 sps:$4 sm:$0xff]   ;;  %v844_v19 = vld [vmem:[#allocation7 + $0x18] ss:$12 sps:$4 sm:$0xff]   ;;  %v847_v22 = vld [vmem:[#allocation7] ss:$12 sps:$4 sm:$0xff]  }
  0x3b   :  { %270 = vmatpush1.bf16.msra.mxu0 %v829_v5  ;;  %v861_v18 = vld [vmem:[#allocation7 + $0x68] ss:$12 sps:$4 sm:$0xff]   ;;  %v845_v20 = vld [vmem:[#allocation7 + $0x4] ss:$12 sps:$4 sm:$0xff]   ;;  %v852_v23 = vld [vmem:[#allocation8 + $0xac] ss:$12 sps:$4 sm:$0xff]  }
  0x3c   :  { %271 = vmatprep.subr.bf16.mxu0 %v830_v6  ;;  %v865_v21 = vld [vmem:[#allocation7 + $0x50] ss:$12 sps:$4 sm:$0xff]   ;;  %v869_v24 = vld [vmem:[#allocation7 + $0x38] ss:$12 sps:$4 sm:$0xff]   ;;  %v850_v26 = vld [vmem:[#allocation8 + $0xa8] ss:$12 sps:$4 sm:$0xff]  }
  0x3d   :  { %775 = vmatpush3.bf16.msra.mxu1 %v853_v12  ;;  %v856_v27 = vld [vmem:[#allocation8 + $0x94] ss:$12 sps:$4 sm:$0xff]   ;;  %v854_v29 = vld [vmem:[#allocation8 + $0x90] ss:$12 sps:$4 sm:$0xff]   ;;  %v858_v32 = vld [vmem:[#allocation8 + $0x78] ss:$12 sps:$4 sm:$0xff]  }
  0x3e   :  { %776 = vmatprep.subr.bf16.mxu1 %v1027_v0  ;;  %v873_v28 = vld [vmem:[#allocation7 + $0x20] ss:$12 sps:$4 sm:$0xff]   ;;  %v860_v30 = vld [vmem:[#allocation8 + $0x7c] ss:$12 sps:$4 sm:$0xff]   ;;  %v864_v33 = vld [vmem:[#allocation8 + $0x64] ss:$12 sps:$4 sm:$0xff]  }
  0x3f   :  { %272 = vmatpush1.bf16.msra.mxu0 %v832_v7  ;;  %v877_v31 = vld [vmem:[#allocation7 + $0x8] ss:$12 sps:$4 sm:$0xff]   ;;  %v881_v34 = vld [vmem:[#allocation8 + $0xb0] ss:$12 sps:$4 sm:$0xff]   ;;  %v862_v35 = vld [vmem:[#allocation8 + $0x60] ss:$12 sps:$4 sm:$0xff]  }
  0x40   :  { %273 = vmatprep.subr.bf16.mxu0 %v833_v8  ;;  %v868_v36 = vld [vmem:[#allocation8 + $0x4c] ss:$12 sps:$4 sm:$0xff]   ;;  %v866_v38 = vld [vmem:[#allocation8 + $0x48] ss:$12 sps:$4 sm:$0xff]   ;;  %v870_v41 = vld [vmem:[#allocation8 + $0x30] ss:$12 sps:$4 sm:$0xff]  }
  0x41   :  { %777 = vmatpush3.bf16.msra.mxu1 %v857_v15  ;;  %v883_v37 = vld [vmem:[#allocation8 + $0x98] ss:$12 sps:$4 sm:$0xff]   ;;  %v872_v39 = vld [vmem:[#allocation8 + $0x34] ss:$12 sps:$4 sm:$0xff]   ;;  %v876_v42 = vld [vmem:[#allocation8 + $0x1c] ss:$12 sps:$4 sm:$0xff]  }
  0x42   :  { %778 = vmatprep.subr.bf16.mxu1 %v1027_v0  ;;  %v884_v40 = vld [vmem:[#allocation8 + $0x80] ss:$12 sps:$4 sm:$0xff]   ;;  %v885_v43 = vld [vmem:[#allocation8 + $0x68] ss:$12 sps:$4 sm:$0xff]   ;;  %v874_v44 = vld [vmem:[#allocation8 + $0x18] ss:$12 sps:$4 sm:$0xff]  }
  0x43   :  { %274 = vmatpush1.bf16.msra.mxu0 %v835_v9  ;;  %v880_v45 = vld [vmem:[#allocation8 + $0x4] ss:$12 sps:$4 sm:$0xff]   ;;  %v878_v47 = vld [vmem:[#allocation8] ss:$12 sps:$4 sm:$0xff]   ;;  %v1101_v48 = vld [vmem:[#allocation5] sm:$0xff]   ;;  %v119_v58 = vshrl.u32 %v118_v56, 7 }
  0x44   :  { %275 = vmatprep.subr.bf16.mxu0 %v836_v11  ;;  %v886_v46 = vld [vmem:[#allocation8 + $0x50] ss:$12 sps:$4 sm:$0xff]   ;;  %v887_v49 = vld [vmem:[#allocation8 + $0x38] ss:$12 sps:$4 sm:$0xff]   ;;  %v888_v50 = vld [vmem:[#allocation8 + $0x20] ss:$12 sps:$4 sm:$0xff]  }
  0x45   :  { %779 = vmatpush3.bf16.msra.mxu1 %v861_v18  ;;  %v889_v51 = vld [vmem:[#allocation8 + $0x8] ss:$12 sps:$4 sm:$0xff]   ;;  %v120_v60 = vsub.s32 0, %v119_v58  ;;  %v116_v61 = vld [vmem:[%s1129_s4] sm:$0x7]  ;;  %v124_v5 = vsub.s32 1, %v119_v58 }
  0x46   :  { %780 = vmatprep.subr.bf16.mxu1 %v1027_v0  ;;  %v383_v63 = vld [vmem:[%s1130_s5] sm:$0x7]  ;;  %s1030_s4 = smov [#allocation10]  }
  0x47   :  { %276 = vmatpush1.bf16.msra.mxu0 %v838_v13  ;;  %v392_v9 = vrot.slane %v383_v63, %v124_v5  ;;  %v125_v11 = vrot.slane %v116_v61, %v124_v5  ;;  %s677_s5 = sshll.u32 %s1030_s4, 4  ;;  %s678_s5 = int_to_ptr.vmem [resolvable:$true] %s677_s5 }
  0x48   :  { %277 = vmatprep.subr.bf16.mxu0 %v839_v14  ;;  %s991_s21 = scalar_lea.vmem %s678_s5, 128  ;;  %p996_p7 = scmp.lt.s32.totalorder %s678_s5, %s678_s5 }
  0x49   :  { %781 = vmatpush3.bf16.msra.mxu1 %v865_v21  ;;  %p992_p6 = scmp.ne.s32.totalorder %s678_s5, %s991_s21  ;;  %p997_p8 = scmp.lt.s32.totalorder %s991_s21, %s991_s21 }
  0x4a   :  { %782 = vmatprep.subr.bf16.mxu1 %v1027_v0 }
  0x4b   :  { %278 = vmatpush1.bf16.msra.mxu0 %v841_v16  ;;  %p998_p9 = por %p997_p8, %p996_p7 }
  0x4c   :  { %279 = vmatprep.subr.bf16.mxu0 %v842_v17 }
  0x4d   :  { %783 = vmatpush3.bf16.msra.mxu1 %v869_v24  ;;  %p999_p10 = pnand %p998_p9, %p992_p6 }
  0x4e   :  { %784 = vmatprep.subr.bf16.mxu1 %v1027_v0 }
  0x4f   :  { %280 = vmatpush1.bf16.msra.mxu0 %v844_v19 }
  0x50   :  { %281 = vmatprep.subr.bf16.mxu0 %v845_v20 }
  0x51   :  { %785 = vmatpush3.bf16.msra.mxu1 %v873_v28 }
  0x52   :  { %786 = vmatprep.subr.bf16.mxu1 %v1027_v0 }
  0x53   :  { %282 = vmatpush1.bf16.msra.mxu0 %v847_v22 }
  0x54   :  { %534 = vmatprep.subr.bf16.mxu0 %v852_v23 }
  0x55   :  { %787 = vmatpush3.bf16.msra.mxu1 %v877_v31 }
  0x56   :  { %300 = vmatmul.mubr.bf16.vlgmr.msra.gmra.mxu0 %v849_v25  ;;  %792 = vmatprep.subr.bf16.mxu1 %v1027_v0 }
  0x57   :  { %535 = vmatpush1.bf16.msra.mxu0 %v850_v26  ;;  %566 = vmatprep.mubr.bf16.mxu0 %v1028_v1  ;;  %v388_v1 = vrot.slane %v383_v63, %v120_v60 }
  0x58   :  { %536 = vmatprep.subr.bf16.mxu0 %v856_v27  ;;  %789 = vmatmul.mubr.bf16.vlgmr.msra.gmra.mxu1 %v849_v25 }
  0x59   :  { %793 = vmatpush3.bf16.msra.mxu1 %v881_v34  ;;  %808 = vmatprep.mubr.msk.bf16.mxu1 %vm1029_vm0, %v1027_v0  ;;  %v128_v34 = vsub.s32 2, %v119_v58  ;;  %v653_v58 = vunpack.c.h.bf16 %v1101_v48 }
  0x5a   :  { %794 = vmatprep.subr.bf16.mxu1 %v1027_v0 }
  0x5b   :  { %537 = vmatpush1.bf16.msra.mxu0 %v854_v29 }
  0x5c   :  { %538 = vmatprep.subr.bf16.mxu0 %v860_v30 }
  0x5d   :  { %795 = vmatpush3.bf16.msra.mxu1 %v883_v37 }
  0x5e   :  { %796 = vmatprep.subr.bf16.mxu1 %v1027_v0 }
  0x5f   :  { %539 = vmatpush1.bf16.msra.mxu0 %v858_v32 }
  0x60   :  { %540 = vmatprep.subr.bf16.mxu0 %v864_v33 }
  0x61   :  { %797 = vmatpush3.bf16.msra.mxu1 %v884_v40 }
  0x62   :  { %798 = vmatprep.subr.bf16.mxu1 %v1027_v0 }
  0x63   :  { %541 = vmatpush1.bf16.msra.mxu0 %v862_v35  ;;  %v396_v35 = vrot.slane %v383_v63, %v128_v34 }
  0x64   :  { %542 = vmatprep.subr.bf16.mxu0 %v868_v36 }
  0x65   :  { %799 = vmatpush3.bf16.msra.mxu1 %v885_v43 }
  0x66   :  { %800 = vmatprep.subr.bf16.mxu1 %v1027_v0 }
  0x67   :  { %543 = vmatpush1.bf16.msra.mxu0 %v866_v38  ;;  %v129_v38 = vrot.slane %v116_v61, %v128_v34 }
  0x68   :  { %544 = vmatprep.subr.bf16.mxu0 %v872_v39 }
  0x69   :  { %801 = vmatpush3.bf16.msra.mxu1 %v886_v46 }
  0x6a   :  { %802 = vmatprep.subr.bf16.mxu1 %v1027_v0 }
  0x6b   :  { %545 = vmatpush1.bf16.msra.mxu0 %v870_v41 }
  0x6c   :  { %546 = vmatprep.subr.bf16.mxu0 %v876_v42 }
  0x6d   :  { %803 = vmatpush3.bf16.msra.mxu1 %v887_v49 }
  0x6e   :  { %804 = vmatprep.subr.bf16.mxu1 %v1027_v0 }
  0x6f   :  { %547 = vmatpush1.bf16.msra.mxu0 %v874_v44 }
  0x70   :  { %548 = vmatprep.subr.bf16.mxu0 %v880_v45 }
  0x71   :  { %805 = vmatpush3.bf16.msra.mxu1 %v888_v50 }
  0x72   :  { %806 = vmatprep.subr.bf16.mxu1 %v1027_v0  ;;  %v121_v0 = vrot.slane %v116_v61, %v120_v60 }
  0x73   :  { %549 = vmatpush1.bf16.msra.mxu0 %v878_v47 }
  0x75   :  { %807 = vmatpush3.bf16.msra.mxu1 %v889_v51 }
  0x76   :  { %567 = vmatmul.mubr.bf16.vlgmr.msra.gmra.mxu0 %v1101_v48 }
  0x78   :  { %809 = vmatmul.mubr.bf16.vlgmr.msra.gmra.mxu1 %v1101_v48 }
 0x116   :  { %v301_v57 = vpop.f32.mrf.mxu0 }
 0x117   :  { %v302_v4 = vadd.f32 %v301_v57, %v121_v0  ;;  %v652_v57 = vunpack.c.l.bf16 %v1101_v48 }
 0x118   :  { %v344_v52 = vpop.f32.mrf.mxu1  ;;  %v303_v59 = vpop.f32.mrf.mxu0 }
 0x119   :  { %v304_v19 = vadd.f32 %v303_v59, %v125_v11  ;;  %v345_v43 = vadd.f32 %v344_v52, %v129_v38 }
 0x11a   :  { %v790_v53 = vpop.f32.mrf.mxu1  ;;  %v305_v62 = vpop.f32.mrf.mxu0 }
 0x11b   :  { %v306_v12 = vadd.f32 %v305_v62, %v121_v0 }
 0x11c   :  { %v1108_v54 = vpop.f32.mrf.mxu1  ;;  %v307_v2 = vpop.f32.mrf.mxu0 }
 0x11d   :  { %v308_v21 = vadd.f32 %v307_v2, %v125_v11  ;;  %v348_v49 = vadd.f32 %v1108_v54, %v129_v38 }
 0x11e   :  { %v791_v55 = vpop.f32.mrf.mxu1 }
 0x136   :  { %v568_v3 = vpop.f32.mrf.mxu0 }
 0x137   :  { %v569_v6 = vadd.f32 %v568_v3, %v388_v1 }
 0x138   :  { %v570_v7 = vpop.f32.mrf.mxu0  ;;  %v611_v22 = vpop.f32.mrf.mxu1 }
 0x139   :  { %v618_v8 = vadd.f32 %v569_v6, %v302_v4  ;;  %v571_v16 = vadd.f32 %v570_v7, %v392_v9  ;;  %v612_v39 = vadd.f32 %v611_v22, %v396_v35 }
 0x13a   :  { %v572_v10 = vpop.f32.mrf.mxu0  ;;  %v810_v25 = vpop.f32.mrf.mxu1 }
 0x13b   :  { %v741_v13 = vmul.f32 -1.442695, %v618_v8  ;;  %v573_v14 = vadd.f32 %v572_v10, %v388_v1  ;;  %v619_v23 = vadd.f32 %v571_v16, %v304_v19 }
 0x13c   :  { %v574_v15 = vpop.f32.mrf.mxu0  ;;  %v614_v26 = vpop.f32.mrf.mxu1 }
 0x13d   :  { %891 = vpow2.f32 %v741_v13  ;;  %v620_v17 = vadd.f32 %v573_v14, %v306_v12  ;;  %v575_v18 = vadd.f32 %v574_v15, %v392_v9  ;;  %v742_v27 = vmul.f32 -1.442695, %v619_v23 }
 0x13e   :  { %v811_v29 = vpop.f32.mrf.mxu1  ;;  %v615_v46 = vadd.f32 %v614_v26, %v396_v35 }
 0x13f   :  { %v743_v20 = vmul.f32 -1.442695, %v620_v17  ;;  %v621_v24 = vadd.f32 %v575_v18, %v308_v21 }
 0x141   :  { %893 = vpow2.f32 %v743_v20  ;;  %v744_v28 = vmul.f32 -1.442695, %v621_v24 }
 0x142   :  { %895 = vpow2.f32 %v742_v27 }
 0x143   :  { %897 = vpow2.f32 %v744_v28 }
 0x14a   :  { %v892_v30 = vpop.eup %891 }
 0x14b   :  { %v634_v31 = vadd.f32 1.0, %v892_v30 }
 0x14d   :  { %899 = vrcp.f32 %v634_v31 }
 0x14e   :  { %v894_v32 = vpop.eup %893 }
 0x14f   :  { %v636_v33 = vadd.f32 1.0, %v894_v32  ;;  %v896_v36 = vpop.eup %895 }
 0x150   :  { %v898_v37 = vpop.eup %897  ;;  %v635_v40 = vadd.f32 1.0, %v896_v36 }
 0x151   :  { %901 = vrcp.f32 %v636_v33  ;;  %v637_v42 = vadd.f32 1.0, %v898_v37 }
 0x152   :  { %903 = vrcp.f32 %v635_v40 }
 0x153   :  { %905 = vrcp.f32 %v637_v42 }
 0x15a   :  { %v900_v41 = vpop.eup %899 }
 0x15b   :  { %v646_v44 = vmul.f32 %v900_v41, %v612_v39 }
 0x15d   :  { %v648_v45 = vadd.f32 %v646_v44, %v345_v43 }
 0x15e   :  { %v902_v47 = vpop.eup %901 }
 0x15f   :  { %907 = vtanh.f32 %v648_v45  ;;  %v647_v50 = vmul.f32 %v902_v47, %v615_v46  ;;  %v904_v53 = vpop.eup %903 }
 0x160   :  { %v906_v55 = vpop.eup %905  ;;  %v654_v52 = vsub.f32 1.0, %v904_v53  ;;  %v658_v63 = vmul.f32 %v904_v53, %v652_v57 }
 0x161   :  { %v649_v51 = vadd.f32 %v647_v50, %v348_v49  ;;  %v655_v59 = vsub.f32 1.0, %v906_v55  ;;  %v659_v0 = vmul.f32 %v906_v55, %v653_v58 }
 0x163   :  { %909 = vtanh.f32 %v649_v51 }
 0x16c   :  { %v908_v56 = vpop.eup %907 }
 0x16d   :  { %v656_v60 = vmul.f32 %v908_v56, %v654_v52 }
 0x16f   :  { %v660_v54 = vadd.f32 %v658_v63, %v656_v60 }
 0x170   :  { %v910_v61 = vpop.eup %909 }
 0x171   :  { %v657_v62 = vmul.f32 %v910_v61, %v655_v59 }
 0x173   :  { %v661_v1 = vadd.f32 %v659_v0, %v657_v62 }
 0x175   :  { %v752_v2 = vpack.c.bf16 %v661_v1, %v660_v54 }
 0x177   :  { %753 = vst [vmem:[#allocation10] sm:$0xff] %v752_v2  }
 0x178   :  { %1002 = shalt.err (!%p999_p10)
}
 0x179   :  { %683 = dma.vmem_to_hbm [thread:$0]  %s678_s5, 128, %s1131_s6, [#allocation4], %s1021_s26, %s1021_s26, %s1022_s27  }
 0x17a   :  { %1017 = dma.done.wait [#allocation4], 128  }
 0x17b   :  { %1018 = vsyncadd [#allocation4], 4294967168 }
 0x17c   :  { %687 = vsyncpa [#allocation3], 1 }
 0x17d   :  { %688 = vsyncpa [#allocation6], 1 }
 0x17e   :  { %689 = vsyncpa [#allocation9], 1 }
 0x17f   :  { %690 = vsyncpa [#allocation4], 1 }

</bundles_post_ra>
